<compile_context>
chip_gen: v6e
topology: v6e:2x2x1
jax: 0.10.0
libtpu: 0.0.40
codegen_flags: <defaults>
</compile_context>

<pallas_src>
import functools
import random

import numpy as np
import jax
import jax.numpy as jnp
from jax.experimental import pallas as pl
from jax.experimental.pallas import tpu as pltpu


# --------------------------------------------------------------------------
# helpers
# --------------------------------------------------------------------------
def _cdiv(a, b):
    return -(-a // b)


def _round_up(x, m):
    return _cdiv(x, m) * m


_VMEM_LIMIT_CACHE = [None]


def _vmem_limit():
    """Per-generation VMEM budget: ~3/4 of physical, capped at 96 MiB."""
    if _VMEM_LIMIT_CACHE[0] is None:
        cap = 64 * 1024 * 1024           # conservative fallback (v7x size)
        try:
            cap = int(pltpu.get_tpu_info().vmem_capacity_bytes)
        except Exception:
            pass
        _VMEM_LIMIT_CACHE[0] = int(min(3 * cap // 4, 96 * 1024 * 1024))
    return _VMEM_LIMIT_CACHE[0]


def _cparams(dims):
    return pltpu.CompilerParams(dimension_semantics=dims,
                                vmem_limit_bytes=_vmem_limit())


# --------------------------------------------------------------------------
# tiled matmul (+bias, +ReLU) -- used for the bicubic resize
# --------------------------------------------------------------------------
def _matmul_kernel(x_ref, w_ref, b_ref, o_ref, acc_ref, *, relu):
    @pl.when(pl.program_id(2) == 0)
    def _():
        acc_ref[...] = jnp.zeros_like(acc_ref)

    acc_ref[...] += jnp.dot(x_ref[...], w_ref[...],
                            preferred_element_type=jnp.float32)

    @pl.when(pl.program_id(2) == pl.num_programs(2) - 1)
    def _():
        r = acc_ref[...] + b_ref[...]
        if relu:
            r = jnp.maximum(r, 0.0)
        o_ref[...] = r.astype(o_ref.dtype)


def pallas_matmul(x, w, b=None, relu=False, out_dtype=jnp.float32,
                  tm=256, tn=256, tk=512):
    """(M,K)@(K,N) + bias, optional ReLU. Tiled over (M,N,K), f32 accumulator."""
    M, K = x.shape
    K2, N = w.shape
    assert K == K2
    tm = min(tm, _round_up(M, 8))
    tn = min(tn, _round_up(N, 128))
    tk = min(tk, _round_up(K, 128))
    Mp, Np, Kp = _round_up(M, tm), _round_up(N, tn), _round_up(K, tk)

    x_pad = jnp.pad(x, ((0, Mp - M), (0, Kp - K)))
    w_pad = jnp.pad(w, ((0, Kp - K), (0, Np - N)))
    if b is None:
        b_pad = jnp.zeros((1, Np), jnp.float32)
    else:
        b_pad = jnp.pad(jnp.asarray(b, jnp.float32).reshape(1, N),
                        ((0, 0), (0, Np - N)))

    grid = (Mp // tm, Np // tn, Kp // tk)
    cost = pl.CostEstimate(
        flops=int(2 * Mp * Np * Kp),
        transcendentals=0,
        bytes_accessed=int(x.dtype.itemsize * (Mp * Kp + Kp * Np) + 4 * Mp * Np))

    out = pl.pallas_call(
        functools.partial(_matmul_kernel, relu=relu),
        out_shape=jax.ShapeDtypeStruct((Mp, Np), out_dtype),
        grid=grid,
        in_specs=[pl.BlockSpec((tm, tk), lambda i, j, k: (i, k)),
                  pl.BlockSpec((tk, tn), lambda i, j, k: (k, j)),
                  pl.BlockSpec((1, tn), lambda i, j, k: (0, j))],
        out_specs=pl.BlockSpec((tm, tn), lambda i, j, k: (i, j)),
        scratch_shapes=[pltpu.VMEM((tm, tn), jnp.float32)],
        compiler_params=_cparams(("parallel", "parallel", "arbitrary")),
        cost_estimate=cost,
    )(x_pad, w_pad, b_pad)
    return out[:M, :N]


# --------------------------------------------------------------------------
# fused 3x3 conv + bias + ReLU (no HBM im2col)
# --------------------------------------------------------------------------
class _ConvLayout:
    """Static row layout for a 3x3/pad-1 conv on a flattened, spatially padded
    NHWC footprint: rows index (b, hp, wp) of the (H+2, W+2) padded image and
    the real footprint lives at array rows [off, off + rows)."""

    def __init__(self, batch, h, w, tm=256):
        self.batch, self.h, self.w = batch, h, w
        self.hp, self.wp = h + 2, w + 2
        self.halo = self.wp + 1                     # max |row shift| of a tap
        self.rows = batch * self.hp * self.wp
        self.tm = min(tm, _round_up(self.rows, 8))
        self.grid = _cdiv(self.rows, self.tm)
        self.off = _round_up(self.halo, self.tm)    # leading slack (mult of tm)
        self.total = self.off + self.grid * self.tm + self.off


def _border_mask(layout):
    m = np.zeros((layout.batch, layout.hp, layout.wp), np.float32)
    m[:, 1:layout.h + 1, 1:layout.w + 1] = 1.0
    full = np.zeros((layout.total, 1), np.float32)
    full[layout.off:layout.off + layout.rows, 0] = m.reshape(-1)
    return jnp.asarray(full)


def _embed_nhwc(x, layout, border=None):
    """(B,H,W,C) -> (total, C) bf16 with the padded footprint at [off, off+rows).
    `border` is the per-channel pad value (used to fold the ScalingLayer)."""
    c = x.shape[-1]
    if border is None:
        xp = jnp.pad(x, ((0, 0), (1, 1), (1, 1), (0, 0)))
    else:
        bcast = border.reshape(1, 1, 1, c).astype(x.dtype)
        xp = jnp.pad(x - bcast, ((0, 0), (1, 1), (1, 1), (0, 0))) + bcast
    flat = xp.reshape(layout.rows, c)
    flat = jnp.pad(flat, ((layout.off, layout.total - layout.off - layout.rows),
                          (0, 0)))
    return flat.astype(jnp.bfloat16)


def _extract_interior(arr, layout, c):
    x = arr[layout.off:layout.off + layout.rows]
    x = x.reshape(layout.batch, layout.hp, layout.wp, c)
    return x[:, 1:layout.h + 1, 1:layout.w + 1, :]


def _conv3x3_kernel(x_hbm, w_ref, b_ref, m_ref, o_ref, xbuf, sem, *,
                    tm, halo, cin, off_in):
    # One grid step produces `tm` rows of the flattened padded output footprint.
    # The halo'd input window is DMAed from HBM once, then the 9 conv taps are
    # accumulated as 9 shifted MXU matmuls (bf16 x bf16 -> f32).
    i = pl.program_id(0)
    span = tm + 2 * halo
    start = i * tm + (off_in - halo)
    cp = pltpu.make_async_copy(x_hbm.at[pl.ds(start, span)], xbuf, sem.at[0])
    cp.start()
    cp.wait()

    wpad = halo - 1                     # == padded image width Wp
    cout = w_ref.shape[1]
    acc = jnp.zeros((tm, cout), jnp.float32)
    tap = 0
    for dy in (-1, 0, 1):
        for dx in (-1, 0, 1):
            s = halo + dy * wpad + dx   # static Python int in [0, 2*halo]
            acc = acc + jnp.dot(xbuf[s:s + tm, :],
                                w_ref[tap * cin:(tap + 1) * cin, :],
                                preferred_element_type=jnp.float32)
            tap += 1
    acc = jnp.maximum(acc + b_ref[...], 0.0)        # bias + ReLU in f32
    o_ref[...] = (acc * m_ref[...]).astype(o_ref.dtype)   # zero the border rows


def conv3x3_relu(xf, layout, w2, b2, mask):
    """3x3 conv, stride 1, pad 1, + ReLU on a flattened padded footprint."""
    kc, cout = w2.shape
    cin = kc // 9
    tm, halo, off = layout.tm, layout.halo, layout.off
    span = tm + 2 * halo
    cost = pl.CostEstimate(
        flops=int(2 * layout.grid * tm * kc * cout),
        transcendentals=0,
        bytes_accessed=int(2 * (layout.grid * span * cin + kc * cout
                                + layout.grid * tm * cout)))
    return pl.pallas_call(
        functools.partial(_conv3x3_kernel, tm=tm, halo=halo, cin=cin, off_in=off),
        out_shape=jax.ShapeDtypeStruct((layout.total, cout), jnp.bfloat16),
        grid=(layout.grid,),
        in_specs=[pl.BlockSpec(memory_space=pl.ANY),              # activations (HBM)
                  pl.BlockSpec((kc, cout), lambda i: (0, 0)),     # tap-major weights
                  pl.BlockSpec((1, cout), lambda i: (0, 0)),      # bias
                  pl.BlockSpec((tm, 1), lambda i: (off // tm + i, 0))],  # border mask
        out_specs=pl.BlockSpec((tm, cout), lambda i: (off // tm + i, 0)),
        scratch_shapes=[pltpu.VMEM((span, cin), jnp.bfloat16),
                        pltpu.SemaphoreType.DMA((1,))],
        compiler_params=_cparams(("parallel",)),
        cost_estimate=cost,
    )(xf, w2, b2, mask)


# --------------------------------------------------------------------------
# 2x2 max pool (single pass over the input)
# --------------------------------------------------------------------------
def _maxpool_kernel(x_ref, o_ref):
    v = x_ref[...].astype(jnp.float32)              # (tb, 2, Wo, 2, C)
    a = jnp.maximum(v[:, 0], v[:, 1])               # (tb, Wo, 2, C)
    o_ref[...] = jnp.maximum(a[:, :, 0], a[:, :, 1]).astype(o_ref.dtype)


def maxpool2x2(x):
    B, H, W, C = x.shape
    Ho, Wo = H // 2, W // 2
    rows = B * Ho
    tb = min(256, _round_up(rows, 8))
    rows_p = _round_up(rows, tb)
    xr = x.reshape(rows, 2, Wo, 2, C)               # free reshape of contiguous NHWC
    if rows_p != rows:
        xr = jnp.pad(xr, ((0, rows_p - rows), (0, 0), (0, 0), (0, 0), (0, 0)))
    out = pl.pallas_call(
        _maxpool_kernel,
        out_shape=jax.ShapeDtypeStruct((rows_p, Wo, C), x.dtype),
        grid=(rows_p // tb,),
        in_specs=[pl.BlockSpec((tb, 2, Wo, 2, C), lambda i: (i, 0, 0, 0, 0))],
        out_specs=pl.BlockSpec((tb, Wo, C), lambda i: (i, 0, 0)),
        compiler_params=_cparams(("parallel",)),
    )(xr)
    return out[:rows].reshape(B, Ho, Wo, C)


# --------------------------------------------------------------------------
# fused LPIPS per-level distance: normalize -> sq diff -> 1x1 conv -> spatial mean
# --------------------------------------------------------------------------
def _lpips_dist_kernel(f_ref, w_ref, o_ref, *, inv_count):
    p = pl.program_id(0)

    @pl.when(p == 0)
    def _():
        o_ref[...] = jnp.zeros_like(o_ref)

    f = f_ref[...].astype(jnp.float32)              # (2, B, tp, C) - f32 elementwise
    f0, f1 = f[0], f[1]
    n0 = f0 / (jnp.sqrt(jnp.sum(f0 * f0, axis=-1, keepdims=True)) + 1e-10)
    n1 = f1 / (jnp.sqrt(jnp.sum(f1 * f1, axis=-1, keepdims=True)) + 1e-10)
    d = (n0 - n1) ** 2                              # (B, tp, C)
    wl = w_ref[...].reshape(1, 1, -1)               # NetLinLayer 1x1 weights
    s = jnp.sum(jnp.sum(d * wl, axis=-1), axis=-1, keepdims=True)   # (B, 1)
    o_ref[...] += s

    @pl.when(p == pl.num_programs(0) - 1)
    def _():
        o_ref[...] = o_ref[...] * inv_count         # spatial_average over H*W


def lpips_layer_distance(feat_arr, layout, c, lin_w):
    """feat_arr holds the stacked (in0, in1) features on the padded footprint;
    border pixels are zero so they contribute nothing to the sums."""
    bpair = layout.batch // 2
    P = layout.hp * layout.wp
    f = feat_arr[layout.off:layout.off + layout.rows].reshape(2, bpair, P, c)
    tp = min(512, _round_up(P, 8))
    Pp = _round_up(P, tp)
    if Pp != P:
        f = jnp.pad(f, ((0, 0), (0, 0), (0, Pp - P), (0, 0)))
    inv = 1.0 / float(layout.h * layout.w)
    return pl.pallas_call(
        functools.partial(_lpips_dist_kernel, inv_count=inv),
        out_shape=jax.ShapeDtypeStruct((bpair, 1), jnp.float32),
        grid=(Pp // tp,),
        in_specs=[pl.BlockSpec((2, bpair, tp, c), lambda p: (0, 0, p, 0)),
                  pl.BlockSpec((1, c), lambda p: (0, 0))],
        out_specs=pl.BlockSpec((bpair, 1), lambda p: (0, 0)),
        compiler_params=_cparams(("arbitrary",)),
    )(f, lin_w.astype(jnp.float32))


# --------------------------------------------------------------------------
# MSE (tiled streaming reduction)
# --------------------------------------------------------------------------
def _mse_kernel(a_ref, b_ref, o_ref, *, inv_count):
    i = pl.program_id(0)

    @pl.when(i == 0)
    def _():
        o_ref[...] = jnp.zeros_like(o_ref)

    d = a_ref[...] - b_ref[...]
    o_ref[...] += jnp.sum(d * d, keepdims=True)

    @pl.when(i == pl.num_programs(0) - 1)
    def _():
        o_ref[...] = o_ref[...] * inv_count


def mse_loss(a, b):
    n = int(a.size)
    lanes = 128
    rows = _cdiv(n, lanes)
    tm = min(512, _round_up(rows, 8))
    rows_p = _round_up(rows, tm)

    def prep(t):
        t = t.reshape(-1).astype(jnp.float32)
        t = jnp.pad(t, (0, rows_p * lanes - n))
        return t.reshape(rows_p, lanes)

    out = pl.pallas_call(
        functools.partial(_mse_kernel, inv_count=1.0 / float(n)),
        out_shape=jax.ShapeDtypeStruct((1, 1), jnp.float32),
        grid=(rows_p // tm,),
        in_specs=[pl.BlockSpec((tm, lanes), lambda i: (i, 0))] * 2,
        out_specs=pl.BlockSpec((1, 1), lambda i: (0, 0)),
        compiler_params=_cparams(("arbitrary",)),
    )(prep(a), prep(b))
    return out[0, 0]


# --------------------------------------------------------------------------
# VGG16 / LPIPS parameters (synthetic, deterministic)
# --------------------------------------------------------------------------
_VGG_CFG = [(3, 64), (64, 64),
            (64, 128), (128, 128),
            (128, 256), (256, 256), (256, 256),
            (256, 512), (512, 512), (512, 512),
            (512, 512), (512, 512), (512, 512)]
_VGG_BLOCKS = (2, 2, 3, 3, 3)          # relu1_2, relu2_2, relu3_3, relu4_3, relu5_3
_LPIPS_CHNS = (64, 128, 256, 512, 512)
_CIN0_PAD = 8                           # pad the 3 input channels to 8 lanes


def init_lpips_params(seed=42):
    key = jax.random.PRNGKey(seed)
    conv_w, conv_b = [], []
    for cin, cout in _VGG_CFG:
        key, kw = jax.random.split(key)
        conv_w.append(jax.random.normal(kw, (cout, cin, 3, 3), jnp.float32)
                      * jnp.sqrt(2.0 / (9 * cin)))
        conv_b.append(jnp.zeros((cout,), jnp.float32))
    lin_w = []
    for c in _LPIPS_CHNS:
        key, kw = jax.random.split(key)
        lin_w.append(jnp.abs(jax.random.normal(kw, (1, c), jnp.float32)) * 0.1)
    shift = jnp.array([-0.030, -0.088, -0.188], jnp.float32)
    scale = jnp.array([0.458, 0.448, 0.450], jnp.float32)
    return dict(conv_w=conv_w, conv_b=conv_b, lin_w=lin_w, shift=shift, scale=scale)


def prepare_kernel_params(params):
    """ScalingLayer folded into conv1; weights reshaped to tap-major bf16."""
    shift, scale = params['shift'], params['scale']
    convs = []
    for li, (w, b) in enumerate(zip(params['conv_w'], params['conv_b'])):
        w = w.astype(jnp.float32)
        b = b.astype(jnp.float32)
        if li == 0:
            b = b - jnp.sum(w * (shift / scale)[None, :, None, None], axis=(1, 2, 3))
            w = w / scale[None, :, None, None]
            w = jnp.pad(w, ((0, 0), (0, _CIN0_PAD - w.shape[1]), (0, 0), (0, 0)))
        cout, cin = w.shape[0], w.shape[1]
        w2 = jnp.transpose(w, (2, 3, 1, 0)).reshape(9 * cin, cout).astype(jnp.bfloat16)
        convs.append((w2, b.reshape(1, cout)))
    lins = [w.astype(jnp.float32) for w in params['lin_w']]
    return dict(convs=convs, lins=lins, shift=params['shift'], scale=params['scale'])


def vgg16_features(x_nhwc, kp):
    """VGG16 through relu5_3 on an NHWC batch; returns (array, layout, C) per level."""
    B, H, W, _ = x_nhwc.shape
    x = jnp.pad(x_nhwc, ((0, 0), (0, 0), (0, 0), (0, _CIN0_PAD - 3)))
    border = jnp.pad(kp['shift'], (0, _CIN0_PAD - 3))   # folded ScalingLayer border
    layout = _ConvLayout(B, H, W)
    cur = _embed_nhwc(x, layout, border=border)
    mask = _border_mask(layout)
    feats = []
    li = 0
    ch = _CIN0_PAD
    for bi, nconv in enumerate(_VGG_BLOCKS):
        if bi > 0:
            pooled = maxpool2x2(_extract_interior(cur, layout, ch))
            H, W = H // 2, W // 2
            layout = _ConvLayout(B, H, W)
            mask = _border_mask(layout)
            cur = _embed_nhwc(pooled, layout)
        for _ in range(nconv):
            w2, b2 = kp['convs'][li]
            cur = conv3x3_relu(cur, layout, w2, b2, mask)
            ch = w2.shape[1]
            li += 1
        feats.append((cur, layout, ch))
    return feats


def lpips(in0_nchw, in1_nchw, kp):
    """LPIPS().eval() forward (lpips=True, spatial=False) -> (B,1,1,1).
    Both inputs are stacked on the batch axis so VGG runs once."""
    x = jnp.concatenate([in0_nchw, in1_nchw], axis=0)
    x = jnp.transpose(x, (0, 2, 3, 1)).astype(jnp.float32)
    feats = vgg16_features(x, kp)
    bpair = in0_nchw.shape[0]
    val = jnp.zeros((bpair, 1), jnp.float32)
    for (arr, layout, c), lw in zip(feats, kp['lins']):
        val = val + lpips_layer_distance(arr, layout, c, lw)
    return val.reshape(bpair, 1, 1, 1)


# --------------------------------------------------------------------------
# padding_and_trimming (bicubic resize expressed as two Pallas matmuls)
# --------------------------------------------------------------------------
def _cubic_np(x, a=-0.75):
    ax = np.abs(x)
    return np.where(ax <= 1.0, ((a + 2.0) * ax - (a + 3.0)) * ax * ax + 1.0,
                    np.where(ax < 2.0, a * (((ax - 5.0) * ax + 8.0) * ax - 4.0), 0.0))


def _bicubic_matrix(in_size, out_size):
    # Matches F.interpolate(mode='bicubic', align_corners=False), A=-0.75,
    # border indices clamped.
    scale = in_size / out_size
    src = (np.arange(out_size, dtype=np.float64) + 0.5) * scale - 0.5
    x0 = np.floor(src)
    t = src - x0
    M = np.zeros((out_size, in_size), np.float32)
    rows = np.arange(out_size)
    for k in range(-1, 3):
        idx = np.clip(x0.astype(np.int64) + k, 0, in_size - 1)
        np.add.at(M, (rows, idx), _cubic_np(t - k).astype(np.float32))
    return jnp.asarray(M)


def resize_bicubic(x_nchw, out_h, out_w):
    B, C, Hin, Win = x_nchw.shape
    Wh = _bicubic_matrix(Hin, out_h)
    Ww = _bicubic_matrix(Win, out_w)
    xt = jnp.transpose(x_nchw, (2, 0, 1, 3)).reshape(Hin, B * C * Win)
    y = pallas_matmul(Wh, xt)                                       # (out_h, B*C*Win)
    y = jnp.transpose(y.reshape(out_h, B, C, Win), (1, 2, 0, 3))    # (B,C,out_h,Win)
    z = pallas_matmul(y.reshape(B * C * out_h, Win), jnp.transpose(Ww))
    return z.reshape(B, C, out_h, out_w)


def padding_and_trimming(x, x_rec):
    # NOTE: random crop offsets are Python-level (as in the reference); shapes
    # change per call, so each call may retrace the tiny resize matmuls.
    _, _, H, W = x.shape
    x_rec = jnp.pad(x_rec, ((0, 0), (0, 0), (15, 15), (15, 15)), mode='edge')
    x = jnp.pad(x, ((0, 0), (0, 0), (15, 15), (15, 15)), mode='edge')
    H_pad, W_pad = x.shape[2], x.shape[3]
    top = random.randrange(0, 16)
    bottom = H_pad - random.randrange(0, 16)
    left = random.randrange(0, 16)
    right = W_pad - random.randrange(0, 16)
    x_rec = resize_bicubic(x_rec[:, :, top:bottom, left:right], H, W)
    x = resize_bicubic(x[:, :, top:bottom, left:right], H, W)
    return x, x_rec


# --------------------------------------------------------------------------
# LPIPS_loss forward
# --------------------------------------------------------------------------
def lpips_loss_forward(reconstructions, inputs, kparams, perceptual_weight=1.0):
    """Equivalent of LPIPS_loss(metric='mse').forward(reconstructions, inputs)."""
    # TODO(synk): ms-ssim metric branch not implemented (ms_ssim undefined in reference).
    inputs, reconstructions = padding_and_trimming(inputs, reconstructions)
    p_loss = lpips(inputs, reconstructions, kparams)        # (B, 1, 1, 1)
    rec_loss = mse_loss(reconstructions, inputs)            # scalar (nn.MSELoss, mean)
    percptual_loss = jnp.mean(rec_loss) + perceptual_weight * jnp.mean(p_loss)
    return rec_loss, p_loss, percptual_loss


if __name__ == "__main__":
    random.seed(0)  # deterministic crop offsets for padding_and_trimming
    params = init_lpips_params(seed=42)
    kparams = prepare_kernel_params(params)

    key = jax.random.PRNGKey(0)
    k1, k2 = jax.random.split(key)
    inputs = jax.random.uniform(k1, (2, 3, 16, 16), jnp.float32, minval=-1.0, maxval=1.0)
    reconstructions = jax.random.uniform(k2, (2, 3, 16, 16), jnp.float32,
                                         minval=-1.0, maxval=1.0)

    rec_loss, p_loss, percptual_loss = lpips_loss_forward(
        reconstructions, inputs, kparams, perceptual_weight=1.0)
    jax.block_until_ready((rec_loss, p_loss, percptual_loss))
    assert p_loss.shape == (2, 1, 1, 1)
    assert rec_loss.shape == () and percptual_loss.shape == ()
    print("KERNEL_OK")
</pallas_src>

<mosaic_0001>
module attributes {stable_mosaic.version = 11 : i64} {
  func.func @_matmul_kernel(%arg0: i32, %arg1: i32, %arg2: i32, %arg3: memref<16x128xf32, #tpu.memory_space<vmem>>, %arg4: memref<128x256xf32, #tpu.memory_space<vmem>>, %arg5: memref<1x256xf32, #tpu.memory_space<vmem>>, %arg6: memref<16x256xf32, #tpu.memory_space<vmem>>, %arg7: memref<16x256xf32, #tpu.memory_space<vmem>>) attributes {dimension_semantics = [#tpu.dimension_semantics<parallel>, #tpu.dimension_semantics<parallel>, #tpu.dimension_semantics<arbitrary>], iteration_bounds = array<i64: 1, 1, 1>, scalar_prefetch = 0 : i64, scratch_operands = 1 : i64, tpu.core_type = #tpu.core_type<tc>, window_params = [{transform_indices = @transform_0, window_bounds = array<i64: 16, 128>}, {transform_indices = @transform_1, window_bounds = array<i64: 128, 256>}, {transform_indices = @transform_2, window_bounds = array<i64: 1, 256>}, {transform_indices = @transform_3, window_bounds = array<i64: 16, 256>}]} {
    %c0_i32 = arith.constant 0 : i32
    %0 = arith.cmpi eq, %arg2, %c0_i32 : i32
    %1 = arith.extui %0 : i1 to i32
    %c0_i32_0 = arith.constant 0 : i32
    %2 = arith.cmpi ne, %1, %c0_i32_0 : i32
    scf.if %2 {
      %cst_10 = arith.constant 0.000000e+00 : f32
      %12 = vector.broadcast %cst_10 : f32 to vector<16x256xf32>
      %c0_11 = arith.constant 0 : index
      %c0_12 = arith.constant 0 : index
      %13 = vector.load %arg7[%c0_11, %c0_12] : memref<16x256xf32, #tpu.memory_space<vmem>>, vector<16x256xf32>
      tpu.vector_store %arg7[%c0_11, %c0_12], %12 {strides = array<i32>} : memref<16x256xf32, #tpu.memory_space<vmem>>, vector<16x256xf32>,
    } else {
    }
    %c0 = arith.constant 0 : index
    %c0_1 = arith.constant 0 : index
    %3 = vector.load %arg7[%c0, %c0_1] : memref<16x256xf32, #tpu.memory_space<vmem>>, vector<16x256xf32>
    %c0_2 = arith.constant 0 : index
    %c0_3 = arith.constant 0 : index
    %4 = vector.load %arg3[%c0_2, %c0_3] : memref<16x128xf32, #tpu.memory_space<vmem>>, vector<16x128xf32>
    %c0_4 = arith.constant 0 : index
    %c0_5 = arith.constant 0 : index
    %5 = vector.load %arg4[%c0_4, %c0_5] : memref<128x256xf32, #tpu.memory_space<vmem>>, vector<128x256xf32>
    %cst = arith.constant dense<0.000000e+00> : vector<16x256xf32>
    %6 = tpu.matmul %4, %5, %cst {dimension_numbers = #tpu.dot_dimension_numbers<[1], [0], [0], [1], [0, 0, 1, 1], [], []>} : vector<16x128xf32>, vector<128x256xf32>, vector<16x256xf32> -> vector<16x256xf32>
    %7 = arith.addf %3, %6 : vector<16x256xf32>
    %c0_6 = arith.constant 0 : index
    %c0_7 = arith.constant 0 : index
    %8 = vector.load %arg7[%c0_6, %c0_7] : memref<16x256xf32, #tpu.memory_space<vmem>>, vector<16x256xf32>
    tpu.vector_store %arg7[%c0_6, %c0_7], %7 {strides = array<i32>} : memref<16x256xf32, #tpu.memory_space<vmem>>, vector<16x256xf32>,
    %c0_i32_8 = arith.constant 0 : i32
    %9 = arith.cmpi eq, %arg2, %c0_i32_8 : i32
    %10 = arith.extui %9 : i1 to i32
    %c0_i32_9 = arith.constant 0 : i32
    %11 = arith.cmpi ne, %10, %c0_i32_9 : i32
    scf.if %11 {
      %c0_10 = arith.constant 0 : index
      %c0_11 = arith.constant 0 : index
      %12 = vector.load %arg7[%c0_10, %c0_11] : memref<16x256xf32, #tpu.memory_space<vmem>>, vector<16x256xf32>
      %c0_12 = arith.constant 0 : index
      %c0_13 = arith.constant 0 : index
      %13 = vector.load %arg5[%c0_12, %c0_13] : memref<1x256xf32, #tpu.memory_space<vmem>>, vector<1x256xf32>
      %14 = vector.broadcast %13 : vector<1x256xf32> to vector<16x256xf32>
      %15 = arith.addf %12, %14 : vector<16x256xf32>
      %c0_14 = arith.constant 0 : index
      %c0_15 = arith.constant 0 : index
      %16 = vector.load %arg6[%c0_14, %c0_15] : memref<16x256xf32, #tpu.memory_space<vmem>>, vector<16x256xf32>
      tpu.vector_store %arg6[%c0_14, %c0_15], %15 {strides = array<i32>} : memref<16x256xf32, #tpu.memory_space<vmem>>, vector<16x256xf32>,
    } else {
    }
    return
  }
  func.func @transform_0(%arg0: i32, %arg1: i32, %arg2: i32) -> (i32, i32) {
    %c0_i32 = arith.constant 0 : i32
    return %arg0, %arg2 : i32, i32
  }
  func.func @transform_1(%arg0: i32, %arg1: i32, %arg2: i32) -> (i32, i32) {
    %c0_i32 = arith.constant 0 : i32
    return %arg2, %arg1 : i32, i32
  }
  func.func @transform_2(%arg0: i32, %arg1: i32, %arg2: i32) -> (i32, i32) {
    %c0_i32 = arith.constant 0 : i32
    %c0_i32_0 = arith.constant 0 : i32
    return %c0_i32, %arg1 : i32, i32
  }
  func.func @transform_3(%arg0: i32, %arg1: i32, %arg2: i32) -> (i32, i32) {
    %c0_i32 = arith.constant 0 : i32
    return %arg0, %arg1 : i32, i32
  }
}

</mosaic_0001>

<bundles_post_ra>
// kernel: tpu_custom_call.1
= control target key start
LH: loop header
LB: loop body
LE: loop exit
PB: predicated region body
PF: predicated region fallthrough
CT: control target
= control target key end

     0   :  { %8 = vsyncpa [#allocation4], 0  ;;  %s371_s0 = inlined_call_operand.hbm [shape: f32[16,128], index: 0, kind: input, shape index: {}]   ;;  %s372_s1 = inlined_call_operand.hbm [shape: f32[128,256], index: 1, kind: input, shape index: {}]   ;;  %s373_s2 = inlined_call_operand.vmem [shape: f32[1,256], index: 2, kind: input, shape index: {}]   ;;  %s374_s3 = inlined_call_operand.hbm [shape: f32[16,256], index: 3, kind: output, shape index: {}]  }
   0x1   :  { %9 = vsyncpa [#allocation7], 0 }
   0x2   :  { %10 = vsyncpa [#allocation5], 0  ;;  %s325_s12 = smov [#allocation3]  }
   0x3   :  { %s16_s13 = sshll.u32 %s325_s12, 4  ;;  %s17_s13 = int_to_ptr.vmem [resolvable:$true] %s16_s13 }
   0x4   :  { %s267_s14 = scalar_lea.vmem %s17_s13, 256  ;;  %p272_p1 = scmp.lt.s32.totalorder %s17_s13, %s17_s13 }
   0x5   :  { %p268_p0 = scmp.ne.s32.totalorder %s17_s13, %s267_s14  ;;  %p273_p2 = scmp.lt.s32.totalorder %s267_s14, %s267_s14 }
   0x7   :  { %p274_p3 = por %p273_p2, %p272_p1 }
   0x9   :  { %p275_p4 = pnand %p274_p3, %p268_p0 }
   0xb   :  { %278 = shalt.err (!%p275_p4)
}
   0xc   :  { %s326_s15 = smov 128   ;;  %s327_s16 = smov 8  }
   0xd   :  { %22 = dma.hbm_to_vmem [thread:$0]  %s371_s0, 256, %s17_s13, [#allocation4], %s326_s15, %s326_s15, %s327_s16  }
   0xe   :  { %s328_s19 = smov [#allocation6]  }
   0xf   :  { %s28_s20 = sshll.u32 %s328_s19, 4  ;;  %s29_s20 = int_to_ptr.vmem [resolvable:$true] %s28_s20 }
  0x10   :  { %s287_s21 = scalar_lea.vmem %s29_s20, 4096  ;;  %p292_p6 = scmp.lt.s32.totalorder %s29_s20, %s29_s20 }
  0x11   :  { %p288_p5 = scmp.ne.s32.totalorder %s29_s20, %s287_s21  ;;  %p293_p7 = scmp.lt.s32.totalorder %s287_s21, %s287_s21 }
  0x13   :  { %p294_p8 = por %p293_p7, %p292_p6 }
  0x15   :  { %p295_p9 = pnand %p294_p8, %p288_p5 }
  0x17   :  { %298 = shalt.err (!%p295_p9)
}
  0x18   :  { %s329_s22 = smov 256   ;;  %s330_s23 = smov 16  }
  0x19   :  { %34 = dma.hbm_to_vmem [thread:$0]  %s372_s1, 4096, %s29_s20, [#allocation7], %s329_s22, %s329_s22, %s330_s23  }
  0x1a   :  { %319 = dma.done.wait [#allocation4], 256  }
  0x1b   :  { %320 = vsyncadd [#allocation4], 4294967040 }
  0x1c   :  { %321 = dma.done.wait [#allocation7], 4096  }
  0x1d   :  { %322 = vsyncadd [#allocation7], 4294963200  ;;  %v331_v0 = vmov 0.0   ;;  %v88_v1 = vld [vmem:[#allocation6 + $0xf8] sm:$0xff]  ;;  %v87_v2 = vld [vmem:[#allocation6 + $0xf0] sm:$0xff]  ;;  %v183_v35 = vlaneseq  ;;  %s332_s26 = smov [#allocation8]  }
  0x1e   :  { %153 = vmatprep.mubr.f32.mxu0 %v331_v0  ;;  %159 = vmatprep.mubr.f32.mxu1 %v331_v0  ;;  %v86_v3 = vld [vmem:[#allocation6 + $0xe8] sm:$0xff]  ;;  %v85_v4 = vld [vmem:[#allocation6 + $0xe0] sm:$0xff]  ;;  %v84_v5 = vld [vmem:[#allocation6 + $0xd8] sm:$0xff]  ;;  %s206_s27 = sshll.u32 %s332_s26, 4  ;;  %s207_s27 = int_to_ptr.vmem [resolvable:$true] %s206_s27 }
  0x1f   :  { %89 = vmatprep.subr.mxu0 %v88_v1  ;;  %219 = vmatprep.subr.mxu1 %v88_v1  ;;  %v83_v6 = vld [vmem:[#allocation6 + $0xd0] sm:$0xff]  ;;  %v82_v7 = vld [vmem:[#allocation6 + $0xc8] sm:$0xff]  ;;  %v81_v8 = vld [vmem:[#allocation6 + $0xc0] sm:$0xff]  ;;  %v184_v36 = vshrl.u32 %v183_v35, 7  ;;  %s299_s28 = scalar_lea.vmem %s207_s27, 512  ;;  %p304_p11 = scmp.lt.s32.totalorder %s207_s27, %s207_s27 }
  0x20   :  { %90 = vmatpush1.msra.mxu0 %v87_v2  ;;  %235 = vmatpush1.msra.mxu1 %v87_v2  ;;  %v80_v9 = vld [vmem:[#allocation6 + $0xb8] sm:$0xff]  ;;  %v79_v10 = vld [vmem:[#allocation6 + $0xb0] sm:$0xff]  ;;  %v78_v11 = vld [vmem:[#allocation6 + $0xa8] sm:$0xff]  ;;  %p300_p10 = scmp.ne.s32.totalorder %s207_s27, %s299_s28  ;;  %p305_p12 = scmp.lt.s32.totalorder %s299_s28, %s299_s28 }
  0x21   :  { %91 = vmatprep.subr.mxu0 %v86_v3  ;;  %220 = vmatprep.subr.mxu1 %v86_v3  ;;  %v77_v12 = vld [vmem:[#allocation6 + $0xa0] sm:$0xff]  ;;  %v76_v13 = vld [vmem:[#allocation6 + $0x98] sm:$0xff]  ;;  %v75_v14 = vld [vmem:[#allocation6 + $0x90] sm:$0xff]  ;;  %v185_v37 = vsub.s32 0, %v184_v36  ;;  %v189_v39 = vsub.s32 1, %v184_v36 }
  0x22   :  { %92 = vmatpush1.msra.mxu0 %v85_v4  ;;  %236 = vmatpush1.msra.mxu1 %v85_v4  ;;  %v74_v15 = vld [vmem:[#allocation6 + $0x88] sm:$0xff]  ;;  %v73_v16 = vld [vmem:[#allocation6 + $0x80] sm:$0xff]  ;;  %v72_v17 = vld [vmem:[#allocation6 + $0x78] sm:$0xff]  ;;  %p306_p13 = por %p305_p12, %p304_p11 }
  0x23   :  { %93 = vmatprep.subr.mxu0 %v84_v5  ;;  %221 = vmatprep.subr.mxu1 %v84_v5  ;;  %v71_v18 = vld [vmem:[#allocation6 + $0x70] sm:$0xff]  ;;  %v70_v19 = vld [vmem:[#allocation6 + $0x68] sm:$0xff]  ;;  %v69_v20 = vld [vmem:[#allocation6 + $0x60] sm:$0xff] }
  0x24   :  { %94 = vmatpush1.msra.mxu0 %v83_v6  ;;  %237 = vmatpush1.msra.mxu1 %v83_v6  ;;  %v68_v21 = vld [vmem:[#allocation6 + $0x58] sm:$0xff]  ;;  %v67_v22 = vld [vmem:[#allocation6 + $0x50] sm:$0xff]  ;;  %v66_v23 = vld [vmem:[#allocation6 + $0x48] sm:$0xff]  ;;  %p307_p0 = pnand %p306_p13, %p300_p10 }
  0x25   :  { %95 = vmatprep.subr.mxu0 %v82_v7  ;;  %222 = vmatprep.subr.mxu1 %v82_v7  ;;  %v65_v24 = vld [vmem:[#allocation6 + $0x40] sm:$0xff]  ;;  %v64_v25 = vld [vmem:[#allocation6 + $0x38] sm:$0xff]  ;;  %v63_v26 = vld [vmem:[#allocation6 + $0x30] sm:$0xff] }
  0x26   :  { %96 = vmatpush1.msra.mxu0 %v81_v8  ;;  %238 = vmatpush1.msra.mxu1 %v81_v8  ;;  %v62_v27 = vld [vmem:[#allocation6 + $0x28] sm:$0xff]  ;;  %v61_v28 = vld [vmem:[#allocation6 + $0x20] sm:$0xff]  ;;  %v60_v29 = vld [vmem:[#allocation6 + $0x18] sm:$0xff] }
  0x27   :  { %97 = vmatprep.subr.mxu0 %v80_v9  ;;  %223 = vmatprep.subr.mxu1 %v80_v9  ;;  %v59_v30 = vld [vmem:[#allocation6 + $0x10] sm:$0xff]  ;;  %v58_v31 = vld [vmem:[#allocation6 + $0x8] sm:$0xff]  ;;  %v57_v32 = vld [vmem:[#allocation6] sm:$0xff] }
  0x28   :  { %98 = vmatpush1.msra.mxu0 %v79_v10  ;;  %239 = vmatpush1.msra.mxu1 %v79_v10  ;;  %v55_v33 = vld [vmem:[#allocation3] sm:$0xff]  ;;  %v56_v34 = vld [vmem:[#allocation3 + $0x8] sm:$0xff] }
  0x29   :  { %99 = vmatprep.subr.mxu0 %v78_v11  ;;  %224 = vmatprep.subr.mxu1 %v78_v11  ;;  %v181_v38 = vld [vmem:[%s373_s2] sm:$0x3] }
  0x2a   :  { %100 = vmatpush1.msra.mxu0 %v77_v12  ;;  %240 = vmatpush1.msra.mxu1 %v77_v12  ;;  %v186_v40 = vrot.slane %v181_v38, %v185_v37  ;;  %v190_v41 = vrot.slane %v181_v38, %v189_v39 }
  0x2b   :  { %101 = vmatprep.subr.mxu0 %v76_v13  ;;  %225 = vmatprep.subr.mxu1 %v76_v13 }
  0x2c   :  { %102 = vmatpush1.msra.mxu0 %v75_v14  ;;  %241 = vmatpush1.msra.mxu1 %v75_v14 }
  0x2d   :  { %103 = vmatprep.subr.mxu0 %v74_v15  ;;  %226 = vmatprep.subr.mxu1 %v74_v15 }
  0x2e   :  { %104 = vmatpush1.msra.mxu0 %v73_v16  ;;  %242 = vmatpush1.msra.mxu1 %v73_v16 }
  0x2f   :  { %105 = vmatprep.subr.mxu0 %v72_v17  ;;  %227 = vmatprep.subr.mxu1 %v72_v17 }
  0x30   :  { %106 = vmatpush1.msra.mxu0 %v71_v18  ;;  %243 = vmatpush1.msra.mxu1 %v71_v18 }
  0x31   :  { %107 = vmatprep.subr.mxu0 %v70_v19  ;;  %228 = vmatprep.subr.mxu1 %v70_v19 }
  0x32   :  { %108 = vmatpush1.msra.mxu0 %v69_v20  ;;  %244 = vmatpush1.msra.mxu1 %v69_v20 }
  0x33   :  { %109 = vmatprep.subr.mxu0 %v68_v21  ;;  %229 = vmatprep.subr.mxu1 %v68_v21 }
  0x34   :  { %110 = vmatpush1.msra.mxu0 %v67_v22  ;;  %245 = vmatpush1.msra.mxu1 %v67_v22 }
  0x35   :  { %111 = vmatprep.subr.mxu0 %v66_v23  ;;  %230 = vmatprep.subr.mxu1 %v66_v23 }
  0x36   :  { %112 = vmatpush1.msra.mxu0 %v65_v24  ;;  %246 = vmatpush1.msra.mxu1 %v65_v24 }
  0x37   :  { %113 = vmatprep.subr.mxu0 %v64_v25  ;;  %231 = vmatprep.subr.mxu1 %v64_v25 }
  0x38   :  { %114 = vmatpush1.msra.mxu0 %v63_v26  ;;  %247 = vmatpush1.msra.mxu1 %v63_v26 }
  0x39   :  { %115 = vmatprep.subr.mxu0 %v62_v27  ;;  %232 = vmatprep.subr.mxu1 %v62_v27 }
  0x3a   :  { %116 = vmatpush1.msra.mxu0 %v61_v28  ;;  %248 = vmatpush1.msra.mxu1 %v61_v28 }
  0x3b   :  { %117 = vmatprep.subr.mxu0 %v60_v29  ;;  %233 = vmatprep.subr.mxu1 %v60_v29 }
  0x3c   :  { %118 = vmatpush1.msra.mxu0 %v59_v30  ;;  %249 = vmatpush1.msra.mxu1 %v59_v30 }
  0x3d   :  { %119 = vmatprep.subr.mxu0 %v58_v31  ;;  %234 = vmatprep.subr.mxu1 %v58_v31 }
  0x3e   :  { %120 = vmatpush1.msra.mxu0 %v57_v32  ;;  %250 = vmatpush1.msra.mxu1 %v57_v32 }
  0x3f   :  { %154 = vmatmul.mubr.f32.vlgmr.msra.gmra.mxu0 %v55_v33  ;;  %160 = vmatmul.mubr.f32.vlgmr.msra.gmra.mxu1 %v56_v34 }
  0xff   :  { %v155_v42 = vpop.f32.mrf.mxu0  ;;  %v161_v43 = vpop.f32.mrf.mxu1 }
 0x100   :  { %v193_v44 = vadd.f32 %v186_v40, %v155_v42  ;;  %v195_v45 = vadd.f32 %v186_v40, %v161_v43 }
 0x101   :  { %v157_v46 = vpop.f32.mrf.mxu0  ;;  %v163_v47 = vpop.f32.mrf.mxu1 }
 0x102   :  { %197 = vst [vmem:[#allocation8] sm:$0xff] %v193_v44  ;;  %199 = vst [vmem:[#allocation8 + $0x10] sm:$0xff] %v195_v45  ;;  %v194_v48 = vadd.f32 %v190_v41, %v157_v46  ;;  %v196_v49 = vadd.f32 %v190_v41, %v163_v47 }
 0x104   :  { %198 = vst [vmem:[#allocation8 + $0x8] sm:$0xff] %v194_v48  ;;  %200 = vst [vmem:[#allocation8 + $0x18] sm:$0xff] %v196_v49 }
 0x105   :  { %310 = shalt.err (!%p307_p0)
}
 0x106   :  { %212 = dma.vmem_to_hbm [thread:$0]  %s207_s27, 512, %s374_s3, [#allocation5], %s329_s22, %s329_s22, %s330_s23  }
 0x107   :  { %323 = dma.done.wait [#allocation5], 512  }
 0x108   :  { %324 = vsyncadd [#allocation5], 4294966784 }
 0x109   :  { %216 = vsyncpa [#allocation4], 1 }
 0x10a   :  { %217 = vsyncpa [#allocation7], 1 }
 0x10b   :  { %218 = vsyncpa [#allocation5], 1 }

</bundles_post_ra>
